<compile_context>
chip_gen: v7x
topology: tpu7x:2x2x1
jax: 0.10.0
libtpu: 0.0.40
codegen_flags: <defaults>
</compile_context>

<pallas_src>
import jax
import jax.numpy as jnp
from jax import lax
from jax.experimental import pallas as pl
from jax.experimental.pallas import tpu as pltpu

# ---- scaled-down Mask2Former / DocSAM config (full model: 256 / 900 / ...) ----
HIDDEN_DIM = 32       # config.hidden_dim
NUM_QUERIES = 16      # config.num_queries
NUM_LABELS = 8        # classes (+1 "no object" logit)
STRIDE = 4            # config.feature_strides[0]
IN_CHANNELS = 3
INIT_STD = 0.02       # config.init_std
CLS_PAD = 128         # lane-dense width for the class-logits output slab


# --------------------------- fused Pallas kernel -----------------------------

def _docsam_fused_kernel(patch_ref, q_ref,
                         stem_w_ref, stem_b_ref,
                         pd_w_ref, pd_b_ref,
                         wo_ref, bo_ref,
                         w1_ref, b1_ref, w2_ref, b2_ref,
                         cls_w_ref, cls_b_ref,
                         me_w1_ref, me_b1_ref, me_w2_ref, me_b2_ref,
                         cls_o_ref, mask_o_ref):
    """One grid step == one image. Everything lives in vregs/VMEM."""
    f32 = jnp.float32

    # --- backbone stem: conv(k=STRIDE, s=STRIDE) as im2col'd matmul ----------
    patches = patch_ref[0]                                           # (P, Kp)
    feats = jnp.dot(patches, stem_w_ref[...],
                    preferred_element_type=f32) + stem_b_ref[...]    # (P, D)

    # --- pixel decoder (1x1 conv + ReLU) -> per-pixel mask features ----------
    mask_feats = jnp.maximum(
        jnp.dot(feats, pd_w_ref[...],
                preferred_element_type=f32) + pd_b_ref[...], 0.0)    # (P, D)

    # --- one decoder layer: cross-attention(queries -> pixels) + FFN ---------
    q = q_ref[...]                                                   # (Q, D)
    scale = float(q.shape[-1]) ** -0.5
    # scores[q, p] = <q[q], mask_feats[p]>  (contract last dims, no transpose)
    scores = lax.dot_general(q, mask_feats, (((1,), (1,)), ((), ())),
                             preferred_element_type=f32) * scale     # (Q, P)
    scores = scores - jnp.max(scores, axis=-1, keepdims=True)
    p_un = jnp.exp(scores)
    probs = p_un * pl.reciprocal(jnp.sum(p_un, axis=-1, keepdims=True),
                                 approx=True)
    attn = jnp.dot(probs, mask_feats, preferred_element_type=f32)    # (Q, D)
    x = q + jnp.dot(attn, wo_ref[...],
                    preferred_element_type=f32) + bo_ref[...]
    h = jnp.maximum(
        jnp.dot(x, w1_ref[...], preferred_element_type=f32) + b1_ref[...], 0.0)
    dec = x + jnp.dot(h, w2_ref[...],
                      preferred_element_type=f32) + b2_ref[...]      # (Q, D)

    # --- class head (weights pre-padded to a 128-lane-dense slab) ------------
    cls = jnp.dot(dec, cls_w_ref[...],
                  preferred_element_type=f32) + cls_b_ref[...]       # (Q, CLS_PAD)
    cls_o_ref[0] = cls.astype(cls_o_ref.dtype)

    # --- mask-embedding MLP ---------------------------------------------------
    me = jnp.maximum(
        jnp.dot(dec, me_w1_ref[...],
                preferred_element_type=f32) + me_b1_ref[...], 0.0)
    me = jnp.dot(me, me_w2_ref[...],
                 preferred_element_type=f32) + me_b2_ref[...]        # (Q, D)

    # --- masks_queries_logits[q, p] = <mask_embed[q], mask_features[p]> ------
    mask_logits = lax.dot_general(me, mask_feats, (((1,), (1,)), ((), ())),
                                  preferred_element_type=f32)        # (Q, P)
    mask_o_ref[0] = mask_logits.astype(mask_o_ref.dtype)


def pallas_docsam_fused(patches, queries, params):
    """patches: (B, P, Kp); queries: (Q, D); returns (cls_pad, mask_logits)."""
    B, P, Kp = patches.shape
    Q, D = queries.shape

    def resident(shape):
        nd = len(shape)
        return pl.BlockSpec(shape, lambda b, _nd=nd: (0,) * _nd)

    weight_order = ("stem_w", "stem_b", "pd_w", "pd_b",
                    "attn_wo", "attn_bo",
                    "ffn_w1", "ffn_b1", "ffn_w2", "ffn_b2",
                    "cls_w", "cls_b",
                    "me_w1", "me_b1", "me_w2", "me_b2")
    weights = [params[name] for name in weight_order]

    in_specs = ([pl.BlockSpec((1, P, Kp), lambda b: (b, 0, 0)),
                 resident((Q, D))]
                + [resident(w.shape) for w in weights])

    out_shape = (jax.ShapeDtypeStruct((B, Q, CLS_PAD), jnp.float32),
                 jax.ShapeDtypeStruct((B, Q, P), jnp.float32))
    out_specs = (pl.BlockSpec((1, Q, CLS_PAD), lambda b: (b, 0, 0)),
                 pl.BlockSpec((1, Q, P), lambda b: (b, 0, 0)))

    return pl.pallas_call(
        _docsam_fused_kernel,
        out_shape=out_shape,
        grid=(B,),
        in_specs=in_specs,
        out_specs=out_specs,
        compiler_params=pltpu.CompilerParams(
            dimension_semantics=("parallel",)),
    )(patches, queries, *weights)


# --------------------------- parameters & forward -----------------------------

def init_params(key):
    D = HIDDEN_DIM
    ks = jax.random.split(key, 9)
    n = lambda k, s: (jax.random.normal(k, s, jnp.float32) * INIT_STD)
    z = lambda s: jnp.zeros(s, jnp.float32)
    # class-head weights zero-padded to a 128-lane-dense output slab
    cls_w = z((D, CLS_PAD)).at[:, :NUM_LABELS + 1].set(
        n(ks[6], (D, NUM_LABELS + 1)))
    return {
        "stem_w": n(ks[0], (STRIDE * STRIDE * IN_CHANNELS, D)), "stem_b": z((1, D)),
        "pd_w": n(ks[1], (D, D)), "pd_b": z((1, D)),
        "queries": n(ks[2], (NUM_QUERIES, D)),
        "attn_wo": n(ks[3], (D, D)), "attn_bo": z((1, D)),
        "ffn_w1": n(ks[4], (D, 4 * D)), "ffn_b1": z((1, 4 * D)),
        "ffn_w2": n(ks[5], (4 * D, D)), "ffn_b2": z((1, D)),
        "cls_w": cls_w, "cls_b": z((1, CLS_PAD)),
        "me_w1": n(ks[7], (D, D)), "me_b1": z((1, D)),
        "me_w2": n(ks[8], (D, D)), "me_b2": z((1, D)),
    }


def docsam_forward(params, pixel_values, pixel_mask):
    B, C, H, W = pixel_values.shape
    Hp, Wp = H // STRIDE, W // STRIDE

    # NCHW -> NHWC, pixel masking + im2col in XLA (fuses; no HBM broadcast mask).
    x = jnp.transpose(pixel_values, (0, 2, 3, 1)).astype(jnp.float32)
    x = x * pixel_mask[:, :, :, None].astype(jnp.float32)
    patches = x.reshape(B, Hp, STRIDE, Wp, STRIDE, C)
    patches = jnp.transpose(patches, (0, 1, 3, 2, 4, 5))
    patches = patches.reshape(B, Hp * Wp, STRIDE * STRIDE * C)

    # Fused per-image Pallas pipeline (one launch, grid over B).
    cls_pad, mask_logits = pallas_docsam_fused(patches, params["queries"], params)

    class_logits = cls_pad[:, :, :NUM_LABELS + 1]
    mask_logits = mask_logits.reshape(B, NUM_QUERIES, Hp, Wp)

    # mirrors Mask2FormerForUniversalSegmentationOutput fields
    return {
        "class_queries_logits": class_logits,   # (B, Q, num_labels + 1)
        "masks_queries_logits": mask_logits,    # (B, Q, H/4, W/4)
    }


if __name__ == "__main__":
    key = jax.random.PRNGKey(0)
    pkey, xkey = jax.random.split(key)
    params = init_params(pkey)

    B, C, H, W = 2, IN_CHANNELS, 32, 32
    pixel_values = jax.random.normal(xkey, (B, C, H, W), jnp.float32)
    pixel_mask = jnp.ones((B, H, W), jnp.int32)
    pixel_mask = pixel_mask.at[1, :, W // 2:].set(0)   # pad-mask half of image 1

    out = jax.jit(docsam_forward)(params, pixel_values, pixel_mask)
    out = jax.block_until_ready(out)

    assert out["class_queries_logits"].shape == (B, NUM_QUERIES, NUM_LABELS + 1)
    assert out["masks_queries_logits"].shape == (B, NUM_QUERIES, H // STRIDE, W // STRIDE)
    assert bool(jnp.all(jnp.isfinite(out["class_queries_logits"])))
    assert bool(jnp.all(jnp.isfinite(out["masks_queries_logits"])))
    print("KERNEL_OK")
</pallas_src>

<mosaic_0001>
module attributes {stable_mosaic.version = 11 : i64} {
  func.func @_docsam_fused_kernel(%arg0: i32, %arg1: memref<1x64x48xf32, #tpu.memory_space<vmem>>, %arg2: memref<16x32xf32, #tpu.memory_space<vmem>>, %arg3: memref<48x32xf32, #tpu.memory_space<vmem>>, %arg4: memref<1x32xf32, #tpu.memory_space<vmem>>, %arg5: memref<32x32xf32, #tpu.memory_space<vmem>>, %arg6: memref<1x32xf32, #tpu.memory_space<vmem>>, %arg7: memref<32x32xf32, #tpu.memory_space<vmem>>, %arg8: memref<1x32xf32, #tpu.memory_space<vmem>>, %arg9: memref<32x128xf32, #tpu.memory_space<vmem>>, %arg10: memref<1x128xf32, #tpu.memory_space<vmem>>, %arg11: memref<128x32xf32, #tpu.memory_space<vmem>>, %arg12: memref<1x32xf32, #tpu.memory_space<vmem>>, %arg13: memref<32x128xf32, #tpu.memory_space<vmem>>, %arg14: memref<1x128xf32, #tpu.memory_space<vmem>>, %arg15: memref<32x32xf32, #tpu.memory_space<vmem>>, %arg16: memref<1x32xf32, #tpu.memory_space<vmem>>, %arg17: memref<32x32xf32, #tpu.memory_space<vmem>>, %arg18: memref<1x32xf32, #tpu.memory_space<vmem>>, %arg19: memref<1x16x128xf32, #tpu.memory_space<vmem>>, %arg20: memref<1x16x64xf32, #tpu.memory_space<vmem>>) attributes {dimension_semantics = [#tpu.dimension_semantics<parallel>], iteration_bounds = array<i64: 2>, scalar_prefetch = 0 : i64, scratch_operands = 0 : i64, tpu.core_type = #tpu.core_type<tc>, window_params = [{transform_indices = @transform_0, window_bounds = array<i64: 1, 64, 48>}, {pipeline_mode = #tpu.pipeline_mode<synchronous>, transform_indices = @transform_1, window_bounds = array<i64: 16, 32>}, {pipeline_mode = #tpu.pipeline_mode<synchronous>, transform_indices = @transform_2, window_bounds = array<i64: 48, 32>}, {pipeline_mode = #tpu.pipeline_mode<synchronous>, transform_indices = @transform_3, window_bounds = array<i64: 1, 32>}, {pipeline_mode = #tpu.pipeline_mode<synchronous>, transform_indices = @transform_4, window_bounds = array<i64: 32, 32>}, {pipeline_mode = #tpu.pipeline_mode<synchronous>, transform_indices = @transform_5, window_bounds = array<i64: 1, 32>}, {pipeline_mode = #tpu.pipeline_mode<synchronous>, transform_indices = @transform_6, window_bounds = array<i64: 32, 32>}, {pipeline_mode = #tpu.pipeline_mode<synchronous>, transform_indices = @transform_7, window_bounds = array<i64: 1, 32>}, {pipeline_mode = #tpu.pipeline_mode<synchronous>, transform_indices = @transform_8, window_bounds = array<i64: 32, 128>}, {pipeline_mode = #tpu.pipeline_mode<synchronous>, transform_indices = @transform_9, window_bounds = array<i64: 1, 128>}, {pipeline_mode = #tpu.pipeline_mode<synchronous>, transform_indices = @transform_10, window_bounds = array<i64: 128, 32>}, {pipeline_mode = #tpu.pipeline_mode<synchronous>, transform_indices = @transform_11, window_bounds = array<i64: 1, 32>}, {pipeline_mode = #tpu.pipeline_mode<synchronous>, transform_indices = @transform_12, window_bounds = array<i64: 32, 128>}, {pipeline_mode = #tpu.pipeline_mode<synchronous>, transform_indices = @transform_13, window_bounds = array<i64: 1, 128>}, {pipeline_mode = #tpu.pipeline_mode<synchronous>, transform_indices = @transform_14, window_bounds = array<i64: 32, 32>}, {pipeline_mode = #tpu.pipeline_mode<synchronous>, transform_indices = @transform_15, window_bounds = array<i64: 1, 32>}, {pipeline_mode = #tpu.pipeline_mode<synchronous>, transform_indices = @transform_16, window_bounds = array<i64: 32, 32>}, {pipeline_mode = #tpu.pipeline_mode<synchronous>, transform_indices = @transform_17, window_bounds = array<i64: 1, 32>}, {transform_indices = @transform_18, window_bounds = array<i64: 1, 16, 128>}, {transform_indices = @transform_19, window_bounds = array<i64: 1, 16, 64>}]} {
    %c0 = arith.constant 0 : index
    %c0_0 = arith.constant 0 : index
    %c0_1 = arith.constant 0 : index
    %0 = vector.load %arg1[%c0, %c0_0, %c0_1] : memref<1x64x48xf32, #tpu.memory_space<vmem>>, vector<1x64x48xf32>
    %1 = vector.shape_cast %0 : vector<1x64x48xf32> to vector<64x48xf32>
    %c0_2 = arith.constant 0 : index
    %c0_3 = arith.constant 0 : index
    %2 = vector.load %arg3[%c0_2, %c0_3] : memref<48x32xf32, #tpu.memory_space<vmem>>, vector<48x32xf32>
    %cst = arith.constant dense<0.000000e+00> : vector<64x32xf32>
    %3 = tpu.matmul %1, %2, %cst {dimension_numbers = #tpu.dot_dimension_numbers<[1], [0], [0], [1], [0, 0, 1, 1], [], []>} : vector<64x48xf32>, vector<48x32xf32>, vector<64x32xf32> -> vector<64x32xf32>
    %c0_4 = arith.constant 0 : index
    %c0_5 = arith.constant 0 : index
    %4 = vector.load %arg4[%c0_4, %c0_5] : memref<1x32xf32, #tpu.memory_space<vmem>>, vector<1x32xf32>
    %5 = vector.broadcast %4 : vector<1x32xf32> to vector<64x32xf32>
    %6 = arith.addf %3, %5 : vector<64x32xf32>
    %c0_6 = arith.constant 0 : index
    %c0_7 = arith.constant 0 : index
    %7 = vector.load %arg5[%c0_6, %c0_7] : memref<32x32xf32, #tpu.memory_space<vmem>>, vector<32x32xf32>
    %cst_8 = arith.constant dense<0.000000e+00> : vector<64x32xf32>
    %8 = tpu.matmul %6, %7, %cst_8 {dimension_numbers = #tpu.dot_dimension_numbers<[1], [0], [0], [1], [0, 0, 1, 1], [], []>} : vector<64x32xf32>, vector<32x32xf32>, vector<64x32xf32> -> vector<64x32xf32>
    %c0_9 = arith.constant 0 : index
    %c0_10 = arith.constant 0 : index
    %9 = vector.load %arg6[%c0_9, %c0_10] : memref<1x32xf32, #tpu.memory_space<vmem>>, vector<1x32xf32>
    %10 = vector.broadcast %9 : vector<1x32xf32> to vector<64x32xf32>
    %11 = arith.addf %8, %10 : vector<64x32xf32>
    %cst_11 = arith.constant 0.000000e+00 : f32
    %12 = vector.broadcast %cst_11 : f32 to vector<64x32xf32>
    %13 = arith.maximumf %11, %12 : vector<64x32xf32>
    %c0_12 = arith.constant 0 : index
    %c0_13 = arith.constant 0 : index
    %14 = vector.load %arg2[%c0_12, %c0_13] : memref<16x32xf32, #tpu.memory_space<vmem>>, vector<16x32xf32>
    %cst_14 = arith.constant dense<0.000000e+00> : vector<16x64xf32>
    %15 = tpu.matmul %14, %13, %cst_14 {dimension_numbers = #tpu.dot_dimension_numbers<[1], [1], [0], [0], [0, 0, 1, 0], [], []>} : vector<16x32xf32>, vector<64x32xf32>, vector<16x64xf32> -> vector<16x64xf32>
    %cst_15 = arith.constant 0.176776692 : f32
    %16 = vector.broadcast %cst_15 : f32 to vector<16x64xf32>
    %17 = arith.mulf %15, %16 : vector<16x64xf32>
    %cst_16 = arith.constant dense<0xFF800000> : vector<16xf32>
    %18 = vector.multi_reduction <maximumf>, %17, %cst_16 [1] : vector<16x64xf32> to vector<16xf32>
    %19 = vector.shape_cast %18 : vector<16xf32> to vector<16x1xf32>
    %20 = vector.broadcast %19 : vector<16x1xf32> to vector<16x64xf32>
    %21 = arith.subf %17, %20 : vector<16x64xf32>
    %22 = math.exp %21 : vector<16x64xf32>
    %cst_17 = arith.constant dense<0.000000e+00> : vector<16xf32>
    %23 = vector.multi_reduction <add>, %22, %cst_17 [1] : vector<16x64xf32> to vector<16xf32>
    %24 = vector.shape_cast %23 : vector<16xf32> to vector<16x1xf32>
    %25 = tpu.reciprocal %24 {approx = true} : vector<16x1xf32> -> vector<16x1xf32>
    %26 = vector.broadcast %25 : vector<16x1xf32> to vector<16x64xf32>
    %27 = arith.mulf %22, %26 : vector<16x64xf32>
    %cst_18 = arith.constant dense<0.000000e+00> : vector<16x32xf32>
    %28 = tpu.matmul %27, %13, %cst_18 {dimension_numbers = #tpu.dot_dimension_numbers<[1], [0], [0], [1], [0, 0, 1, 1], [], []>} : vector<16x64xf32>, vector<64x32xf32>, vector<16x32xf32> -> vector<16x32xf32>
    %c0_19 = arith.constant 0 : index
    %c0_20 = arith.constant 0 : index
    %29 = vector.load %arg7[%c0_19, %c0_20] : memref<32x32xf32, #tpu.memory_space<vmem>>, vector<32x32xf32>
    %cst_21 = arith.constant dense<0.000000e+00> : vector<16x32xf32>
    %30 = tpu.matmul %28, %29, %cst_21 {dimension_numbers = #tpu.dot_dimension_numbers<[1], [0], [0], [1], [0, 0, 1, 1], [], []>} : vector<16x32xf32>, vector<32x32xf32>, vector<16x32xf32> -> vector<16x32xf32>
    %31 = arith.addf %14, %30 : vector<16x32xf32>
    %c0_22 = arith.constant 0 : index
    %c0_23 = arith.constant 0 : index
    %32 = vector.load %arg8[%c0_22, %c0_23] : memref<1x32xf32, #tpu.memory_space<vmem>>, vector<1x32xf32>
    %33 = vector.broadcast %32 : vector<1x32xf32> to vector<16x32xf32>
    %34 = arith.addf %31, %33 : vector<16x32xf32>
    %c0_24 = arith.constant 0 : index
    %c0_25 = arith.constant 0 : index
    %35 = vector.load %arg9[%c0_24, %c0_25] : memref<32x128xf32, #tpu.memory_space<vmem>>, vector<32x128xf32>
    %cst_26 = arith.constant dense<0.000000e+00> : vector<16x128xf32>
    %36 = tpu.matmul %34, %35, %cst_26 {dimension_numbers = #tpu.dot_dimension_numbers<[1], [0], [0], [1], [0, 0, 1, 1], [], []>} : vector<16x32xf32>, vector<32x128xf32>, vector<16x128xf32> -> vector<16x128xf32>
    %c0_27 = arith.constant 0 : index
    %c0_28 = arith.constant 0 : index
    %37 = vector.load %arg10[%c0_27, %c0_28] : memref<1x128xf32, #tpu.memory_space<vmem>>, vector<1x128xf32>
    %38 = vector.broadcast %37 : vector<1x128xf32> to vector<16x128xf32>
    %39 = arith.addf %36, %38 : vector<16x128xf32>
    %cst_29 = arith.constant 0.000000e+00 : f32
    %40 = vector.broadcast %cst_29 : f32 to vector<16x128xf32>
    %41 = arith.maximumf %39, %40 : vector<16x128xf32>
    %c0_30 = arith.constant 0 : index
    %c0_31 = arith.constant 0 : index
    %42 = vector.load %arg11[%c0_30, %c0_31] : memref<128x32xf32, #tpu.memory_space<vmem>>, vector<128x32xf32>
    %cst_32 = arith.constant dense<0.000000e+00> : vector<16x32xf32>
    %43 = tpu.matmul %41, %42, %cst_32 {dimension_numbers = #tpu.dot_dimension_numbers<[1], [0], [0], [1], [0, 0, 1, 1], [], []>} : vector<16x128xf32>, vector<128x32xf32>, vector<16x32xf32> -> vector<16x32xf32>
    %44 = arith.addf %34, %43 : vector<16x32xf32>
    %c0_33 = arith.constant 0 : index
    %c0_34 = arith.constant 0 : index
    %45 = vector.load %arg12[%c0_33, %c0_34] : memref<1x32xf32, #tpu.memory_space<vmem>>, vector<1x32xf32>
    %46 = vector.broadcast %45 : vector<1x32xf32> to vector<16x32xf32>
    %47 = arith.addf %44, %46 : vector<16x32xf32>
    %c0_35 = arith.constant 0 : index
    %c0_36 = arith.constant 0 : index
    %48 = vector.load %arg13[%c0_35, %c0_36] : memref<32x128xf32, #tpu.memory_space<vmem>>, vector<32x128xf32>
    %cst_37 = arith.constant dense<0.000000e+00> : vector<16x128xf32>
    %49 = tpu.matmul %47, %48, %cst_37 {dimension_numbers = #tpu.dot_dimension_numbers<[1], [0], [0], [1], [0, 0, 1, 1], [], []>} : vector<16x32xf32>, vector<32x128xf32>, vector<16x128xf32> -> vector<16x128xf32>
    %c0_38 = arith.constant 0 : index
    %c0_39 = arith.constant 0 : index
    %50 = vector.load %arg14[%c0_38, %c0_39] : memref<1x128xf32, #tpu.memory_space<vmem>>, vector<1x128xf32>
    %51 = vector.broadcast %50 : vector<1x128xf32> to vector<16x128xf32>
    %52 = arith.addf %49, %51 : vector<16x128xf32>
    %c0_40 = arith.constant 0 : index
    %c0_41 = arith.constant 0 : index
    %c0_42 = arith.constant 0 : index
    %53 = vector.load %arg19[%c0_40, %c0_41, %c0_42] : memref<1x16x128xf32, #tpu.memory_space<vmem>>, vector<1x16x128xf32>
    %54 = vector.shape_cast %53 : vector<1x16x128xf32> to vector<16x128xf32>
    %55 = vector.shape_cast %52 : vector<16x128xf32> to vector<1x16x128xf32>
    tpu.vector_store %arg19[%c0_40, %c0_41, %c0_42], %55 {strides = array<i32>} : memref<1x16x128xf32, #tpu.memory_space<vmem>>, vector<1x16x128xf32>,
    %c0_43 = arith.constant 0 : index
    %c0_44 = arith.constant 0 : index
    %56 = vector.load %arg15[%c0_43, %c0_44] : memref<32x32xf32, #tpu.memory_space<vmem>>, vector<32x32xf32>
    %cst_45 = arith.constant dense<0.000000e+00> : vector<16x32xf32>
    %57 = tpu.matmul %47, %56, %cst_45 {dimension_numbers = #tpu.dot_dimension_numbers<[1], [0], [0], [1], [0, 0, 1, 1], [], []>} : vector<16x32xf32>, vector<32x32xf32>, vector<16x32xf32> -> vector<16x32xf32>
    %c0_46 = arith.constant 0 : index
    %c0_47 = arith.constant 0 : index
    %58 = vector.load %arg16[%c0_46, %c0_47] : memref<1x32xf32, #tpu.memory_space<vmem>>, vector<1x32xf32>
    %59 = vector.broadcast %58 : vector<1x32xf32> to vector<16x32xf32>
    %60 = arith.addf %57, %59 : vector<16x32xf32>
    %cst_48 = arith.constant 0.000000e+00 : f32
    %61 = vector.broadcast %cst_48 : f32 to vector<16x32xf32>
    %62 = arith.maximumf %60, %61 : vector<16x32xf32>
    %c0_49 = arith.constant 0 : index
    %c0_50 = arith.constant 0 : index
    %63 = vector.load %arg17[%c0_49, %c0_50] : memref<32x32xf32, #tpu.memory_space<vmem>>, vector<32x32xf32>
    %cst_51 = arith.constant dense<0.000000e+00> : vector<16x32xf32>
    %64 = tpu.matmul %62, %63, %cst_51 {dimension_numbers = #tpu.dot_dimension_numbers<[1], [0], [0], [1], [0, 0, 1, 1], [], []>} : vector<16x32xf32>, vector<32x32xf32>, vector<16x32xf32> -> vector<16x32xf32>
    %c0_52 = arith.constant 0 : index
    %c0_53 = arith.constant 0 : index
    %65 = vector.load %arg18[%c0_52, %c0_53] : memref<1x32xf32, #tpu.memory_space<vmem>>, vector<1x32xf32>
    %66 = vector.broadcast %65 : vector<1x32xf32> to vector<16x32xf32>
    %67 = arith.addf %64, %66 : vector<16x32xf32>
    %cst_54 = arith.constant dense<0.000000e+00> : vector<16x64xf32>
    %68 = tpu.matmul %67, %13, %cst_54 {dimension_numbers = #tpu.dot_dimension_numbers<[1], [1], [0], [0], [0, 0, 1, 0], [], []>} : vector<16x32xf32>, vector<64x32xf32>, vector<16x64xf32> -> vector<16x64xf32>
    %c0_55 = arith.constant 0 : index
    %c0_56 = arith.constant 0 : index
    %c0_57 = arith.constant 0 : index
    %69 = vector.load %arg20[%c0_55, %c0_56, %c0_57] : memref<1x16x64xf32, #tpu.memory_space<vmem>>, vector<1x16x64xf32>
    %70 = vector.shape_cast %69 : vector<1x16x64xf32> to vector<16x64xf32>
    %71 = vector.shape_cast %68 : vector<16x64xf32> to vector<1x16x64xf32>
    tpu.vector_store %arg20[%c0_55, %c0_56, %c0_57], %71 {strides = array<i32>} : memref<1x16x64xf32, #tpu.memory_space<vmem>>, vector<1x16x64xf32>,
    return
  }
  func.func @transform_0(%arg0: i32) -> (i32, i32, i32) {
    %c0_i32 = arith.constant 0 : i32
    %c0_i32_0 = arith.constant 0 : i32
    %c0_i32_1 = arith.constant 0 : i32
    return %arg0, %c0_i32, %c0_i32_0 : i32, i32, i32
  }
  func.func @transform_1(%arg0: i32) -> (i32, i32) {
    %c0_i32 = arith.constant 0 : i32
    %c0_i32_0 = arith.constant 0 : i32
    %c0_i32_1 = arith.constant 0 : i32
    return %c0_i32, %c0_i32_0 : i32, i32
  }
  func.func @transform_2(%arg0: i32) -> (i32, i32) {
    %c0_i32 = arith.constant 0 : i32
    %c0_i32_0 = arith.constant 0 : i32
    %c0_i32_1 = arith.constant 0 : i32
    return %c0_i32, %c0_i32_0 : i32, i32
  }
  func.func @transform_3(%arg0: i32) -> (i32, i32) {
    %c0_i32 = arith.constant 0 : i32
    %c0_i32_0 = arith.constant 0 : i32
    %c0_i32_1 = arith.constant 0 : i32
    return %c0_i32, %c0_i32_0 : i32, i32
  }
  func.func @transform_4(%arg0: i32) -> (i32, i32) {
    %c0_i32 = arith.constant 0 : i32
    %c0_i32_0 = arith.constant 0 : i32
    %c0_i32_1 = arith.constant 0 : i32
    return %c0_i32, %c0_i32_0 : i32, i32
  }
  func.func @transform_5(%arg0: i32) -> (i32, i32) {
    %c0_i32 = arith.constant 0 : i32
    %c0_i32_0 = arith.constant 0 : i32
    %c0_i32_1 = arith.constant 0 : i32
    return %c0_i32, %c0_i32_0 : i32, i32
  }
  func.func @transform_6(%arg0: i32) -> (i32, i32) {
    %c0_i32 = arith.constant 0 : i32
    %c0_i32_0 = arith.constant 0 : i32
    %c0_i32_1 = arith.constant 0 : i32
    return %c0_i32, %c0_i32_0 : i32, i32
  }
  func.func @transform_7(%arg0: i32) -> (i32, i32) {
    %c0_i32 = arith.constant 0 : i32
    %c0_i32_0 = arith.constant 0 : i32
    %c0_i32_1 = arith.constant 0 : i32
    return %c0_i32, %c0_i32_0 : i32, i32
  }
  func.func @transform_8(%arg0: i32) -> (i32, i32) {
    %c0_i32 = arith.constant 0 : i32
    %c0_i32_0 = arith.constant 0 : i32
    %c0_i32_1 = arith.constant 0 : i32
    return %c0_i32, %c0_i32_0 : i32, i32
  }
  func.func @transform_9(%arg0: i32) -> (i32, i32) {
    %c0_i32 = arith.constant 0 : i32
    %c0_i32_0 = arith.constant 0 : i32
    %c0_i32_1 = arith.constant 0 : i32
    return %c0_i32, %c0_i32_0 : i32, i32
  }
  func.func @transform_10(%arg0: i32) -> (i32, i32) {
    %c0_i32 = arith.constant 0 : i32
    %c0_i32_0 = arith.constant 0 : i32
    %c0_i32_1 = arith.constant 0 : i32
    return %c0_i32, %c0_i32_0 : i32, i32
  }
  func.func @transform_11(%arg0: i32) -> (i32, i32) {
    %c0_i32 = arith.constant 0 : i32
    %c0_i32_0 = arith.constant 0 : i32
    %c0_i32_1 = arith.constant 0 : i32
    return %c0_i32, %c0_i32_0 : i32, i32
  }
  func.func @transform_12(%arg0: i32) -> (i32, i32) {
    %c0_i32 = arith.constant 0 : i32
    %c0_i32_0 = arith.constant 0 : i32
    %c0_i32_1 = arith.constant 0 : i32
    return %c0_i32, %c0_i32_0 : i32, i32
  }
  func.func @transform_13(%arg0: i32) -> (i32, i32) {
    %c0_i32 = arith.constant 0 : i32
    %c0_i32_0 = arith.constant 0 : i32
    %c0_i32_1 = arith.constant 0 : i32
    return %c0_i32, %c0_i32_0 : i32, i32
  }
  func.func @transform_14(%arg0: i32) -> (i32, i32) {
    %c0_i32 = arith.constant 0 : i32
    %c0_i32_0 = arith.constant 0 : i32
    %c0_i32_1 = arith.constant 0 : i32
    return %c0_i32, %c0_i32_0 : i32, i32
  }
  func.func @transform_15(%arg0: i32) -> (i32, i32) {
    %c0_i32 = arith.constant 0 : i32
    %c0_i32_0 = arith.constant 0 : i32
    %c0_i32_1 = arith.constant 0 : i32
    return %c0_i32, %c0_i32_0 : i32, i32
  }
  func.func @transform_16(%arg0: i32) -> (i32, i32) {
    %c0_i32 = arith.constant 0 : i32
    %c0_i32_0 = arith.constant 0 : i32
    %c0_i32_1 = arith.constant 0 : i32
    return %c0_i32, %c0_i32_0 : i32, i32
  }
  func.func @transform_17(%arg0: i32) -> (i32, i32) {
    %c0_i32 = arith.constant 0 : i32
    %c0_i32_0 = arith.constant 0 : i32
    %c0_i32_1 = arith.constant 0 : i32
    return %c0_i32, %c0_i32_0 : i32, i32
  }
  func.func @transform_18(%arg0: i32) -> (i32, i32, i32) {
    %c0_i32 = arith.constant 0 : i32
    %c0_i32_0 = arith.constant 0 : i32
    %c0_i32_1 = arith.constant 0 : i32
    return %arg0, %c0_i32, %c0_i32_0 : i32, i32, i32
  }
  func.func @transform_19(%arg0: i32) -> (i32, i32, i32) {
    %c0_i32 = arith.constant 0 : i32
    %c0_i32_0 = arith.constant 0 : i32
    %c0_i32_1 = arith.constant 0 : i32
    return %arg0, %c0_i32, %c0_i32_0 : i32, i32, i32
  }
}

</mosaic_0001>

<bundles_post_ra>
// kernel: docsam_forward.1
= control target key start
LH: loop header
LB: loop body
LE: loop exit
PB: predicated region body
PF: predicated region fallthrough
CT: control target
= control target key end

     0   :  { %s2825_s0 = inlined_call_operand.vmem [shape: f32[2,64,48], index: 0, kind: input, shape index: {}]   ;;  %s2826_s1 = inlined_call_operand.vmem [shape: f32[16,32], index: 1, kind: input, shape index: {}]   ;;  %s2827_s2 = inlined_call_operand.vmem [shape: f32[48,32], index: 2, kind: input, shape index: {}]   ;;  %s2828_s3 = inlined_call_operand.vmem [shape: f32[1,32], index: 3, kind: input, shape index: {}]   ;;  %s2829_s4 = inlined_call_operand.vmem [shape: f32[32,32], index: 4, kind: input, shape index: {}]   ;;  %s2830_s5 = inlined_call_operand.vmem [shape: f32[1,32], index: 5, kind: input, shape index: {}]   ;;  %s2831_s6 = inlined_call_operand.vmem [shape: f32[32,32], index: 6, kind: input, shape index: {}]   ;;  %s2832_s7 = inlined_call_operand.vmem [shape: f32[1,32], index: 7, kind: input, shape index: {}]   ;;  %s2833_s8 = inlined_call_operand.vmem [shape: f32[32,128], index: 8, kind: input, shape index: {}]   ;;  %s2834_s9 = inlined_call_operand.vmem [shape: f32[1,128], index: 9, kind: input, shape index: {}]   ;;  %s2835_s10 = inlined_call_operand.vmem [shape: f32[128,32], index: 10, kind: input, shape index: {}]   ;;  %s2836_s11 = inlined_call_operand.vmem [shape: f32[1,32], index: 11, kind: input, shape index: {}]   ;;  %s2837_s12 = inlined_call_operand.vmem [shape: f32[32,128], index: 12, kind: input, shape index: {}]   ;;  %s2838_s13 = inlined_call_operand.vmem [shape: f32[1,128], index: 13, kind: input, shape index: {}]   ;;  %s2839_s14 = inlined_call_operand.vmem [shape: f32[32,32], index: 14, kind: input, shape index: {}]   ;;  %s2840_s15 = inlined_call_operand.vmem [shape: f32[1,32], index: 15, kind: input, shape index: {}]   ;;  %s2841_s16 = inlined_call_operand.vmem [shape: f32[32,32], index: 16, kind: input, shape index: {}]   ;;  %s2842_s17 = inlined_call_operand.vmem [shape: f32[1,32], index: 17, kind: input, shape index: {}]   ;;  %s2843_s18 = inlined_call_operand.vmem [shape: f32[2,16,128], index: 18, kind: output, shape index: {0}]   ;;  %s2844_s19 = inlined_call_operand.vmem [shape: f32[2,16,64], index: 19, kind: output, shape index: {1}]  }
   0x1   :  { %2847 = sst [smem:[#allocation2_spill]] %s2825_s0  ;;  %s2513_s0 = smov 0  }
   0x2   :  { %2848 = sst [smem:[#allocation3_spill]] %s2826_s1 }
   0x3   :  { %2849 = sst [smem:[#allocation4_spill]] %s2827_s2 }
   0x4   :  { %2850 = sst [smem:[#allocation5_spill]] %s2828_s3 }
   0x5 LB: > { %s1866_s30 = sadd.s32 4294967295, %s2411_s0   ;;  %p1870_p0 = scmp.ge.s32.totalorder %s2411_s0, 1  ;;  %s2411_s0 = sphi %s2513_s0, %s30_s0  }
   0x6   : > { %p540_p1 = scmp.lt.s32.totalorder %s2411_s0, 3 }
   0x8   : > { %p541_p2 = pnand %p1870_p0, %p540_p1 }
   0x9   : > { %s2851_s1 = sld [smem:[#allocation4_spill]] (!%p541_p2)  ;;  %p601_p3 = scmp.lt.s32.totalorder (!%p541_p2), %s1866_s30, 1  ;;  %vm637_vm0 = vcmask (!%p541_p2), 392192   ;;  %v767_v10 = vld [vmem:[%s2829_s4] sm:$0xff] (!%p541_p2)  ;;  %v768_v11 = vld [vmem:[%s2829_s4 + $0x8] sm:$0xff] (!%p541_p2)  ;;  %v769_v13 = vld [vmem:[%s2829_s4 + $0x10] sm:$0xff] (!%p541_p2) }
   0xa   : > { %544 = sbr.rel (%p541_p2) target bundleno = 2554 (0x9fa), region = 92  ;;  %s2852_s2 = sld [smem:[#allocation2_spill]] (!%p541_p2)  ;;  %v2245_v12 = vpack.c.bf16 (!%p541_p2), %v768_v11, %v767_v10  ;;  %v770_v14 = vld [vmem:[%s2829_s4 + $0x18] sm:$0xff] (!%p541_p2)  ;;  %vm778_vm1 = vcmask (!%p541_p2), 261120   ;;  %v1886_v41 = vld [vmem:[%s2830_s5] ss:$0 sm:$0xff] (!%p541_p2) }
   0xb   : > { %v2249_v17 = vpack.c.bf16 (!%p541_p2), %v770_v14, %v769_v13  ;;  %s2854_s25 = sld [smem:[#allocation3_spill]] (!%p541_p2)  ;;  %vm2588_vm2 = vmpackc.low (!%p541_p2), %vm778_vm1, %vm778_vm1  ;;  %vm1025_vm3 = vcmask (!%p541_p2), 523264  }
   0xf   : > { %v624_v0 = vld [vmem:[%s2851_s1] sm:$0xff] (!%p541_p2)  ;;  %v625_v1 = vld [vmem:[%s2851_s1 + $0x8] sm:$0xff] (!%p541_p2)  ;;  %v626_v2 = vld [vmem:[%s2851_s1 + $0x10] sm:$0xff] (!%p541_p2) }
  0x10   : > { %v2233_v3 = vpack.c.bf16 (!%p541_p2), %v625_v1, %v624_v0  ;;  %v627_v4 = vld [vmem:[%s2851_s1 + $0x18] sm:$0xff] (!%p541_p2)  ;;  %v628_v6 = vld [vmem:[%s2851_s1 + $0x20] sm:$0xff] (!%p541_p2)  ;;  %v629_v7 = vld [vmem:[%s2851_s1 + $0x28] sm:$0xff] (!%p541_p2) }
  0x11   : > { %v2237_v5 = vpack.c.bf16 %v627_v4, %v626_v2  ;;  %s2858_s30 = smov (!%p601_p3, %s1866_s30), 1  ;;  %v2241_v8 = vpack.c.bf16 %v629_v7, %v628_v6  ;;  %v2579_v40 = vld [vmem:[%s2854_s25] sm:$0xff]  ;;  %v2635_v7 = vld [vmem:[%s2854_s25 + $0x8] sm:$0xff] }
  0x12   : > { %2234 = vmatprep.subr.bf16.mxu1 %v2233_v3  ;;  %s1935_s20 = sshll.u32 %s2858_s30, 6 }
  0x13   : > { %2236 = vmatpush3.bf16.msra.mxu1 %v2233_v3  ;;  %s605_s23 = scalar_lea.vmem %s2852_s2, %s1935_s20  ;;  %s2853_s2 = sld [smem:[#allocation5_spill]] }
  0x14   : > { %2238 = vmatprep.subr.bf16.mxu1 %v2237_v5  ;;  %v616_v9 = vld [vmem:[%s605_s23] sm:$0xff]  ;;  %v617_v15 = vld [vmem:[%s605_s23 + $0x8] sm:$0xff]  ;;  %v618_v16 = vld [vmem:[%s605_s23 + $0x10] sm:$0xff]  ;;  %s1936_s20 = sshll.u32 %s2858_s30, 4 }
  0x15   : > { %2054 = vmatprep.mubr.msk.f32.mxu1 %vm637_vm0, %v616_v9  ;;  %v619_v18 = vld [vmem:[%s605_s23 + $0x18] sm:$0xff]  ;;  %v620_v19 = vld [vmem:[%s605_s23 + $0x20] sm:$0xff]  ;;  %v621_v20 = vld [vmem:[%s605_s23 + $0x28] sm:$0xff]  ;;  %s610_s24 = scalar_lea.vmem %s2843_s18, %s1936_s20  ;;  %s615_s22 = scalar_lea.vmem %s2844_s19, %s1936_s20 }
  0x16   : > { %v622_v21 = vld [vmem:[%s605_s23 + $0x30] sm:$0xff]  ;;  %v623_v22 = vld [vmem:[%s605_s23 + $0x38] sm:$0xff] }
  0x17   : > { %2240 = vmatpush3.bf16.msra.mxu1 %v2237_v5 }
  0x18   : > { %2242 = vmatprep.subr.bf16.mxu1 %v2241_v8 }
  0x19   : > { %v1877_v23 = vld [vmem:[%s2853_s2] ss:$0 sm:$0xff] }
  0x1b   : > { %2244 = vmatpush3.bf16.msra.mxu1 %v2241_v8 }
  0x1c   : > { %2246 = vmatprep.subr.bf16.mxu1 %v2245_v12 }
  0x1e   : > { %2055 = vmatmul.mubr.msk.f32.vlgmr.msra.gmra.mrb[0].mxu1 %vm637_vm0, %v617_v15 }
  0x1f   : > { %2057 = vmatprep.mubr.msk.f32.mxu1 %vm637_vm0, %v618_v16  ;;  %2248 = vmatpush3.bf16.msra.mxu1 %v2245_v12 }
  0x20   : > { %2250 = vmatprep.subr.bf16.mxu1 %v2249_v17 }
  0x22   : > { %2058 = vmatmul.mubr.msk.f32.gmra.mrb[2].mxu1 %vm637_vm0, %v619_v18 }
  0x23   : > { %2060 = vmatprep.mubr.msk.f32.mxu1 %vm637_vm0, %v620_v19  ;;  %2252 = vmatpush3.bf16.msra.mxu1 %v2249_v17 }
  0x26   : > { %2061 = vmatmul.mubr.msk.f32.gmra.mrb[4].mxu1 %vm637_vm0, %v621_v20 }
  0x27   : > { %2063 = vmatprep.mubr.msk.f32.mxu1 %vm637_vm0, %v622_v21 }
  0x2a   : > { %2064 = vmatmul.mubr.msk.f32.gmra.mrb[6].mxu1 %vm637_vm0, %v623_v22 }
  0xf1   : > { %v2056_v24 = vpop.f32.mrb[0].mxu1 }
  0xf2   : > { %v728_v25 = vpop.f32.mrb[1].mxu1  ;;  %v734_v27 = vadd.f32 %v2056_v24, %v1877_v23  ;;  %v1129_v24 = vld [vmem:[%s2831_s6] sm:$0xff] }
  0xf3   : > { %v729_v26 = vadd.f32 %v1877_v23, %v728_v25  ;;  %v1130_v25 = vld [vmem:[%s2831_s6 + $0x8] sm:$0xff] }
  0xf5   : > { %v2059_v28 = vpop.f32.mrb[2].mxu1  ;;  %2074 = vmatprep.mubr.msk.f32.mxu1 %vm778_vm1, %v729_v26  ;;  %v2293_v26 = vpack.c.bf16 %v1130_v25, %v1129_v24 }
  0xf6   : > { %v744_v29 = vadd.f32 %v2059_v28, %v1877_v23  ;;  %v738_v30 = vpop.f32.mrb[3].mxu1  ;;  %2075 = vmatmul.mubr.msk.f32.vlgmr.msra.gmra.mrb[8].mxu1 %vm778_vm1, %v734_v27 }
  0xf7   : > { %v739_v31 = vadd.f32 %v1877_v23, %v738_v30 }
  0xf9   : > { %2077 = vmatprep.mubr.msk.f32.mxu1 %vm778_vm1, %v739_v31  ;;  %v2062_v32 = vpop.f32.mrb[4].mxu1  ;;  %v1131_v31 = vld [vmem:[%s2831_s6 + $0x10] sm:$0xff] }
  0xfa   : > { %2078 = vmatmul.mubr.msk.f32.gmra.mrb[10].mxu1 %vm778_vm1, %v744_v29  ;;  %v754_v33 = vadd.f32 %v2062_v32, %v1877_v23  ;;  %v748_v34 = vpop.f32.mrb[5].mxu1  ;;  %v1132_v32 = vld [vmem:[%s2831_s6 + $0x18] sm:$0xff] }
  0xfb   : > { %v749_v35 = vadd.f32 %v1877_v23, %v748_v34 }
  0xfd   : > { %2080 = vmatprep.mubr.msk.f32.mxu1 %vm778_vm1, %v749_v35  ;;  %v2065_v36 = vpop.f32.mrb[6].mxu1  ;;  %v2297_v35 = vpack.c.bf16 %v1132_v32, %v1131_v31 }
  0xfe   : > { %2081 = vmatmul.mubr.msk.f32.gmra.mrb[12].mxu1 %vm778_vm1, %v754_v33  ;;  %v764_v37 = vadd.f32 %v2065_v36, %v1877_v23  ;;  %v758_v38 = vpop.f32.mrb[7].mxu1  ;;  %v1225_v36 = vld [vmem:[%s2833_s8] sm:$0xff] }
  0xff   : > { %v759_v39 = vadd.f32 %v1877_v23, %v758_v38 }
 0x101   : > { %2083 = vmatprep.mubr.msk.f32.mxu1 %vm778_vm1, %v759_v39 }
 0x102   : > { %2084 = vmatmul.mubr.msk.f32.gmra.mrb[14].mxu1 %vm778_vm1, %v764_v37  ;;  %v1226_v37 = vld [vmem:[%s2833_s8 + $0x8] sm:$0xff] }
 0x103   : > { %2102 = vmatprep.mubr.msk.f32.mxu1 %vm778_vm1, %v2579_v40  ;;  %v2301_v38 = vpack.c.bf16 %v1226_v37, %v1225_v36  ;;  %v1517_v37 = vld [vmem:[%s2839_s14 + $0x10] sm:$0xff] }
 0x1c9   : > { %v2076_v42 = vpop.f32.mrb[8].mxu1 }
 0x1ca   : > { %v875_v43 = vadd.f32 %v2076_v42, %v1886_v41  ;;  %v869_v44 = vpop.f32.mrb[9].mxu1  ;;  %v1227_v42 = vld [vmem:[%s2833_s8 + $0x10] sm:$0xff] }
 0x1cb   : > { %v870_v45 = vadd.f32 %v1886_v41, %v869_v44 }
 0x1cc   : > { %v909_v46 = vmax.f32 %v875_v43, 0.0  ;;  %v1228_v43 = vld [vmem:[%s2833_s8 + $0x18] sm:$0xff] }
 0x1cd   : > { %v908_v47 = vmax.f32 %v870_v45, 0.0  ;;  %v2079_v48 = vpop.f32.mrb[10].mxu1  ;;  %v2305_v44 = vpack.c.bf16 %v1228_v43, %v1227_v42  ;;  %v1319_v45 = vld [vmem:[%s2835_s10] sm:$0xff] }
 0x1ce   : > { %v885_v49 = vadd.f32 %v2079_v48, %v1886_v41  ;;  %v879_v50 = vpop.f32.mrb[11].mxu1  ;;  %v1603_v43 = vld [vmem:[%s2841_s16] sm:$0xff] }
 0x1cf   : > { %v2592_v52 = vpack.c.bf16 %v909_v46, %v908_v47  ;;  %v880_v53 = vadd.f32 %v1886_v41, %v879_v50  ;;  %v1320_v46 = vld [vmem:[%s2835_s10 + $0x8] sm:$0xff]  ;;  %v1321_v47 = vld [vmem:[%s2835_s10 + $0x10] sm:$0xff] }
 0x1d0   : > { %v911_v54 = vmax.f32 %v885_v49, 0.0  ;;  %v2309_v48 = vpack.c.bf16 %v1320_v46, %v1319_v45  ;;  %v1322_v49 = vld [vmem:[%s2835_s10 + $0x18] sm:$0xff]  ;;  %v1605_v46 = vld [vmem:[%s2841_s16 + $0x10] sm:$0xff] }
 0x1d1   : > { %v910_v55 = vmax.f32 %v880_v53, 0.0  ;;  %2255 = vmatprep.subr.msk.bf16.mxu1 %vm2588_vm2, %v2592_v52  ;;  %2278 = vmatprep.subr.bf16.mxu0 %v2592_v52  ;;  %v2082_v56 = vpop.f32.mrb[12].mxu1  ;;  %v2313_v50 = vpack.c.bf16 %v1322_v49, %v1321_v47  ;;  %v1323_v53 = vld [vmem:[%s2835_s10 + $0x20] sm:$0xff]  ;;  %v1606_v47 = vld [vmem:[%s2841_s16 + $0x18] sm:$0xff] }
 0x1d2   : > { %2258 = vmatpush3.bf16.xpose.msk.msra.mxu1 %vm2588_vm2, %v2592_v52  ;;  %2280 = vmatpush3.bf16.msra.mxu0 %v2592_v52  ;;  %v895_v57 = vadd.f32 %v2082_v56, %v1886_v41  ;;  %v889_v58 = vpop.f32.mrb[13].mxu1  ;;  %v1325_v56 = vld [vmem:[%s2835_s10 + $0x30] sm:$0xff]  ;;  %v1914_v49 = vld [vmem:[%s2838_s13] ss:$0 sm:$0xff] }
 0x1d3   : > { %v2602_v59 = vpack.c.bf16 %v911_v54, %v910_v55  ;;  %v890_v60 = vadd.f32 %v1886_v41, %v889_v58  ;;  %v1324_v54 = vld [vmem:[%s2835_s10 + $0x28] sm:$0xff] }
 0x1d4   : > { %v913_v61 = vmax.f32 %v895_v57, 0.0  ;;  %v2317_v55 = vpack.c.bf16 %v1324_v54, %v1323_v53  ;;  %v1326_v57 = vld [vmem:[%s2835_s10 + $0x38] sm:$0xff] }
 0x1d5   : > { %2282 = vmatprep.subr.bf16.mxu0 %v2602_v59  ;;  %v912_v62 = vmax.f32 %v890_v60, 0.0  ;;  %2261 = vmatprep.subr.msk.bf16.mxu1 %vm2588_vm2, %v2602_v59  ;;  %v2085_v63 = vpop.f32.mrb[14].mxu1  ;;  %v2321_v58 = vpack.c.bf16 %v1326_v57, %v1325_v56  ;;  %v1327_v60 = vld [vmem:[%s2835_s10 + $0x40] sm:$0xff] }
 0x1d6   : > { %2284 = vmatpush3.bf16.msra.mxu0 %v2602_v59  ;;  %v905_v0 = vadd.f32 %v2085_v63, %v1886_v41  ;;  %v899_v1 = vpop.f32.mrb[15].mxu1  ;;  %v1329_v63 = vld [vmem:[%s2835_s10 + $0x50] sm:$0xff]  ;;  %v1917_v56 = vld [vmem:[%s2840_s15] ss:$0 sm:$0xff] }
 0x1d7   : > { %v2609_v2 = vpack.c.bf16 %v913_v61, %v912_v62  ;;  %v900_v3 = vadd.f32 %v1886_v41, %v899_v1  ;;  %v1328_v61 = vld [vmem:[%s2835_s10 + $0x48] sm:$0xff] }
 0x1d8   : > { %v915_v4 = vmax.f32 %v905_v0, 0.0  ;;  %v2325_v62 = vpack.c.bf16 %v1328_v61, %v1327_v60  ;;  %v1330_v0 = vld [vmem:[%s2835_s10 + $0x58] sm:$0xff] }
 0x1d9   : > { %2286 = vmatprep.subr.bf16.mxu0 %v2609_v2  ;;  %v914_v5 = vmax.f32 %v900_v3, 0.0  ;;  %v2329_v1 = vpack.c.bf16 %v1330_v0, %v1329_v63  ;;  %v1331_v3 = vld [vmem:[%s2835_s10 + $0x60] sm:$0xff] }
 0x1da   : > { %2264 = vmatpush3.bf16.xpose.msk.msra.mxu1 %vm2588_vm2, %v2602_v59  ;;  %2288 = vmatpush3.bf16.msra.mxu0 %v2609_v2 }
 0x1db   : > { %v2616_v6 = vpack.c.bf16 %v915_v4, %v914_v5  ;;  %2267 = vmatprep.subr.msk.bf16.mxu1 %vm2588_vm2, %v2609_v2  ;;  %v1332_v4 = vld [vmem:[%s2835_s10 + $0x68] sm:$0xff] }
 0x1dc   : > { %v2333_v5 = vpack.c.bf16 %v1332_v4, %v1331_v3 }
 0x1dd   : > { %2290 = vmatprep.subr.bf16.mxu0 %v2616_v6 }
 0x1de   : > { %2292 = vmatpush3.bf16.msra.mxu0 %v2616_v6 }
 0x1df   : > { %2294 = vmatprep.subr.bf16.mxu0 %v2293_v26 }
 0x1e2   : > { %2270 = vmatpush3.bf16.xpose.msk.msra.mxu1 %vm2588_vm2, %v2609_v2 }
 0x1e3   : > { %2273 = vmatprep.subr.msk.bf16.mxu1 %vm2588_vm2, %v2616_v6 }
 0x1ea   : > { %2276 = vmatpush3.bf16.xpose.msk.msra.mxu1 %vm2588_vm2, %v2616_v6 }
 0x1eb   : > { %2310 = vmatprep.subr.bf16.mxu1 %v2309_v48 }
 0x1f1   : > { %2103 = vmatmul.mubr.msk.f32.vlgmr.msra.gmra.mrb[16].mxu1 %vm778_vm1, %v2635_v7 }
 0x1f2   : > { %2312 = vmatpush3.bf16.msra.mxu1 %v2309_v48  ;;  %v2361_v48 = vpack.c.bf16 %v1606_v47, %v1605_v46 }
 0x1f3   : > { %2314 = vmatprep.subr.bf16.mxu1 %v2313_v50 }
 0x1f6   : > { %2316 = vmatpush3.bf16.msra.mxu1 %v2313_v50 }
 0x1f7   : > { %2318 = vmatprep.subr.bf16.mxu1 %v2317_v55 }
 0x1fa   : > { %2320 = vmatpush3.bf16.msra.mxu1 %v2317_v55 }
 0x1fb   : > { %2322 = vmatprep.subr.bf16.mxu1 %v2321_v58 }
 0x1fe   : > { %2324 = vmatpush3.bf16.msra.mxu1 %v2321_v58 }
 0x1ff   : > { %2326 = vmatprep.subr.bf16.mxu1 %v2325_v62 }
 0x202   : > { %2328 = vmatpush3.bf16.msra.mxu1 %v2325_v62 }
 0x203   : > { %2330 = vmatprep.subr.bf16.mxu1 %v2329_v1 }
 0x206   : > { %2332 = vmatpush3.bf16.msra.mxu1 %v2329_v1 }
 0x207   : > { %2334 = vmatprep.subr.bf16.mxu1 %v2333_v5 }
 0x20a   : > { %2336 = vmatpush3.bf16.msra.mxu1 %v2333_v5 }
 0x2c4   : > { %v2104_v8 = vpop.f32.mrb[16].mxu1 }
 0x2c5   : > { %v1014_v9 = vpop.f32.mrb[17].mxu1  ;;  %v1024_v11 = vmul.f32 0.17677669, %v2104_v8 }
 0x2c6   : > { %v1023_v10 = vmul.f32 0.17677669, %v1014_v9 }
 0x2c7   : > { %v1029_v13 = vsel %vm1025_vm3, %v1024_v11, -inf }
 0x2c8   : > { %v1026_v12 = vsel %vm1025_vm3, %v1023_v10, -inf }
 0x2c9   : > { %1027 = vmax.xlane.f32.xlu0 %v1026_v12 }
 0x2cd   : > { %1030 = vmax.xlane.f32.xlu0 %v1029_v13 }
 0x356   : > { %v1028_v14 = vpop.xlane.xlu0 %1027 }
 0x357   : > { %v1032_v15 = vsub.f32 %v1023_v10, %v1028_v14  ;;  %v1909_v10 = vld [vmem:[%s2832_s7] ss:$0 sm:$0xff] }
 0x359   : > { %v1034_v16 = vmul.f32 1.442695, %v1032_v15  ;;  %v1333_v15 = vld [vmem:[%s2835_s10 + $0x70] sm:$0xff] }
 0x35a   : > { %v1031_v17 = vpop.xlane.xlu0 %1030 }
 0x35b   : > { %2397 = vpow2.f32 %v1034_v16  ;;  %v1033_v18 = vsub.f32 %v1024_v11, %v1031_v17  ;;  %v1422_v17 = vld [vmem:[%s2837_s12 + $0x8] sm:$0xff] }
 0x35d   : > { %v1036_v19 = vmul.f32 1.442695, %v1033_v18 }
 0x35f   : > { %2399 = vpow2.f32 %v1036_v19  ;;  %v1910_v19 = vld [vmem:[%s2834_s9] ss:$0 sm:$0xff] }
 0x365   : > { %v2398_v20 = vpop.eup %2397 }
 0x366   : > { %v1038_v21 = vsel %vm1025_vm3, %v2398_v20, 0.0 }
 0x367   : > { %1039 = vadd.xlane.f32.xlu1 %v1038_v21 }
 0x369   : > { %v2400_v22 = vpop.eup %2399 }
 0x36a   : > { %v1041_v23 = vsel %vm1025_vm3, %v2400_v22, 0.0 }
 0x36b   : > { %1042 = vadd.xlane.f32.xlu1 %v1041_v23 }
 0x3f4   : > { %v1040_v27 = vpop.xlane.xlu1 %1039 }
 0x3f5   : > { %2401 = vrcp.f32 %v1040_v27  ;;  %v1424_v27 = vld [vmem:[%s2837_s12 + $0x18] sm:$0xff] }
 0x3f8   : > { %v1043_v28 = vpop.xlane.xlu1 %1042 }
 0x3f9   : > { %2403 = vrcp.f32 %v1043_v28 }
 0x3ff   : > { %v2402_v29 = vpop.eup %2401 }
 0x400   : > { %v1046_v30 = vmul.f32 %v2402_v29, %v2398_v20  ;;  %v1515_v29 = vld [vmem:[%s2839_s14] sm:$0xff] }
 0x402   : > { %2121 = vmatprep.mubr.msk.f32.mxu0 %vm1025_vm3, %v1046_v30  ;;  %v1516_v30 = vld [vmem:[%s2839_s14 + $0x8] sm:$0xff] }
 0x403   : > { %v2404_v33 = vpop.eup %2403  ;;  %v2349_v31 = vpack.c.bf16 %v1516_v30, %v1515_v29 }
 0x404   : > { %v1047_v34 = vmul.f32 %v2404_v33, %v2400_v22 }
 0x406   : > { %2122 = vmatmul.mubr.msk.f32.vlgmr.msra.gmra.mrb[0].mxu0 %vm1025_vm3, %v1047_v34  ;;  %v1913_v34 = vld [vmem:[%s2836_s11] ss:$0 sm:$0xff] }
 0x407   : > { %2296 = vmatpush3.bf16.msra.mxu0 %v2293_v26  ;;  %v1423_v26 = vld [vmem:[%s2837_s12 + $0x10] sm:$0xff] }
 0x408   : > { %2298 = vmatprep.subr.bf16.mxu0 %v2297_v35  ;;  %v2345_v28 = vpack.c.bf16 %v1424_v27, %v1423_v26 }
 0x40b   : > { %2300 = vmatpush3.bf16.msra.mxu0 %v2297_v35 }
 0x40c   : > { %2302 = vmatprep.subr.bf16.mxu0 %v2301_v38 }
 0x4d9   : > { %v2123_v39 = vpop.f32.mrb[0].mxu0 }
 0x4da   : > { %v1120_v41 = vpop.f32.mrb[1].mxu0 }
 0x4db   : > { %2132 = vmatprep.mubr.msk.f32.mxu0 %vm778_vm1, %v1120_v41 }
 0x4dc   : > { %2133 = vmatmul.mubr.msk.f32.vlgmr.msra.gmra.mrb[2].mxu0 %vm778_vm1, %v2123_v39 }
 0x4dd   : > { %2304 = vmatpush3.bf16.msra.mxu0 %v2301_v38  ;;  %v1518_v38 = vld [vmem:[%s2839_s14 + $0x18] sm:$0xff] }
 0x4de   : > { %2306 = vmatprep.subr.bf16.mxu0 %v2305_v44  ;;  %v2353_v42 = vpack.c.bf16 %v1518_v38, %v1517_v37 }
 0x4e1   : > { %2308 = vmatpush3.bf16.msra.mxu0 %v2305_v44  ;;  %v1604_v44 = vld [vmem:[%s2841_s16 + $0x8] sm:$0xff] }
 0x4e2   : > { %v2357_v45 = vpack.c.bf16 %v1604_v44, %v1603_v43 }
 0x5af   : > { %v2134_v8 = vpop.f32.mrb[2].mxu0 }
 0x5b0   : > { %v1215_v9 = vadd.f32 %v2134_v8, %v2635_v7  ;;  %v1205_v11 = vpop.f32.mrb[3].mxu0  ;;  %v1334_v7 = vld [vmem:[%s2835_s10 + $0x78] sm:$0xff] }
 0x5b1   : > { %v1214_v12 = vadd.f32 %v1205_v11, %v2579_v40  ;;  %v2337_v16 = vpack.c.bf16 %v1334_v7, %v1333_v15  ;;  %v1421_v40 = vld [vmem:[%s2837_s12] sm:$0xff] }
 0x5b2   : > { %v1224_v14 = vadd.f32 %v1909_v10, %v1215_v9  ;;  %v2341_v18 = vpack.c.bf16 %v1422_v17, %v1421_v40 }
 0x5b3   : > { %v1223_v13 = vadd.f32 %v1909_v10, %v1214_v12  ;;  %2338 = vmatprep.subr.bf16.mxu1 %v2337_v16 }
 0x5b4   : > { %2340 = vmatpush3.bf16.msra.mxu1 %v2337_v16  ;;  %2342 = vmatprep.subr.bf16.mxu0 %v2341_v18 }
 0x5b5   : > { %2143 = vmatprep.mubr.msk.f32.mxu0 %vm778_vm1, %v1223_v13 }
 0x5b6   : > { %2144 = vmatmul.mubr.msk.f32.vlgmr.msra.gmra.mrb[4].mxu0 %vm778_vm1, %v1224_v14 }
 0x5b7   : > { %2344 = vmatpush3.bf16.msra.mxu0 %v2341_v18 }
 0x5b8   : > { %2346 = vmatprep.subr.bf16.mxu0 %v2345_v28 }
 0x5bb   : > { %2348 = vmatpush3.bf16.msra.mxu0 %v2345_v28 }
 0x5bc   : > { %2350 = vmatprep.subr.bf16.mxu0 %v2349_v31 }
 0x689   : > { %v2145_v20 = vpop.f32.mrb[4].mxu0 }
 0x68a   : > { %v1314_v21 = vadd.f32 %v2145_v20, %v1910_v19  ;;  %v1308_v22 = vpop.f32.mrb[5].mxu0 }
 0x68b   : > { %v1309_v23 = vadd.f32 %v1910_v19, %v1308_v22 }
 0x68c   : > { %v1318_v25 = vmax.f32 %v1314_v21, 0.0 }
 0x68d   : > { %v1317_v24 = vmax.f32 %v1309_v23, 0.0 }
 0x68f   : > { %2178 = vmatprep.mubr.f32.mxu1 %v1317_v24 }
 0x690   : > { %2179 = vmatmul.mubr.f32.vlgmr.msra.gmra.mrb[18].mxu1 %v1318_v25 }
 0x763   : > { %v2180_v32 = vpop.f32.mrb[18].mxu1 }
 0x764   : > { %v1411_v33 = vadd.f32 %v2180_v32, %v1224_v14  ;;  %v1401_v35 = vpop.f32.mrb[19].mxu1 }
 0x765   : > { %v1410_v36 = vadd.f32 %v1401_v35, %v1223_v13 }
 0x766   : > { %v1420_v41 = vadd.f32 %v1913_v34, %v1411_v33 }
 0x767   : > { %v1419_v39 = vadd.f32 %v1913_v34, %v1410_v36 }
 0x769   : > { %2189 = vmatprep.mubr.msk.f32.mxu0 %vm778_vm1, %v1419_v39 }
 0x76a   : > { %2190 = vmatmul.mubr.msk.f32.vlgmr.msra.gmra.mrb[6].mxu0 %vm778_vm1, %v1420_v41 }
 0x76b   : > { %2352 = vmatpush3.bf16.msra.mxu0 %v2349_v31  ;;  %2200 = vmatprep.mubr.msk.f32.mxu0 %vm778_vm1, %v1419_v39 }
 0x76c   : > { %2354 = vmatprep.subr.bf16.mxu0 %v2353_v42 }
 0x76f   : > { %2356 = vmatpush3.bf16.msra.mxu0 %v2353_v42 }
 0x770   : > { %2358 = vmatprep.subr.bf16.mxu0 %v2357_v45 }
 0x772   : > { %2201 = vmatmul.mubr.msk.f32.vlgmr.msra.gmra.mrb[8].mxu0 %vm778_vm1, %v1420_v41 }
 0x773   : > { %2360 = vmatpush3.bf16.msra.mxu0 %v2357_v45 }
 0x774   : > { %2362 = vmatprep.subr.bf16.mxu0 %v2361_v48 }
 0x777   : > { %2364 = vmatpush3.bf16.msra.mxu0 %v2361_v48 }
 0x778   : > { %2367 = vmatprep.subr.msk.bf16.mxu0 %vm2588_vm2, %v2592_v52 }
 0x83d   : > { %v2191_v50 = vpop.f32.mrb[6].mxu0 }
 0x83e   : > { %v1510_v53 = vadd.f32 %v2191_v50, %v1914_v49  ;;  %v1504_v54 = vpop.f32.mrb[7].mxu0 }
 0x83f   : > { %v1505_v55 = vadd.f32 %v1914_v49, %v1504_v54 }
 0x840   : > { %1514 = vst [vmem:[%s610_s24 + $0x8] sm:$0xff] %v1510_v53 }
 0x841   : > { %1513 = vst [vmem:[%s610_s24] sm:$0xff] %v1505_v55 }
 0x845   : > { %v2202_v57 = vpop.f32.mrb[8].mxu0 }
 0x846   : > { %v1598_v58 = vadd.f32 %v2202_v57, %v1917_v56  ;;  %v1592_v60 = vpop.f32.mrb[9].mxu0 }
 0x847   : > { %v1593_v61 = vadd.f32 %v1917_v56, %v1592_v60 }
 0x848   : > { %v1602_v63 = vmax.f32 %v1598_v58, 0.0 }
 0x849   : > { %v1601_v62 = vmax.f32 %v1593_v61, 0.0 }
 0x84b   : > { %2211 = vmatprep.mubr.msk.f32.mxu0 %vm778_vm1, %v1601_v62 }
 0x84c   : > { %2212 = vmatmul.mubr.msk.f32.vlgmr.msra.gmra.mrb[10].mxu0 %vm778_vm1, %v1602_v63 }
 0x84d   : > { %2370 = vmatpush3.bf16.xpose.msk.msra.mxu0 %vm2588_vm2, %v2592_v52  ;;  %v1920_v52 = vld [vmem:[%s2842_s17] ss:$0 sm:$0xff] }
 0x84e   : > { %2373 = vmatprep.subr.msk.bf16.mxu0 %vm2588_vm2, %v2602_v59 }
 0x855   : > { %2376 = vmatpush3.bf16.xpose.msk.msra.mxu0 %vm2588_vm2, %v2602_v59 }
 0x856   : > { %2379 = vmatprep.subr.msk.bf16.mxu0 %vm2588_vm2, %v2609_v2 }
 0x85d   : > { %2382 = vmatpush3.bf16.xpose.msk.msra.mxu0 %vm2588_vm2, %v2609_v2 }
 0x85e   : > { %2385 = vmatprep.subr.msk.bf16.mxu0 %vm2588_vm2, %v2616_v6 }
 0x865   : > { %2388 = vmatpush3.bf16.xpose.msk.msra.mxu0 %vm2588_vm2, %v2616_v6 }
 0x91f   : > { %v2213_v59 = vpop.f32.mrb[10].mxu0 }
 0x920   : > { %v1686_v0 = vpop.f32.mrb[11].mxu0  ;;  %v1692_v3 = vadd.f32 %v2213_v59, %v1920_v52 }
 0x921   : > { %v1687_v1 = vadd.f32 %v1920_v52, %v1686_v0 }
 0x923   : > { %2230 = vmatprep.mubr.msk.f32.mxu0 %vm778_vm1, %v1687_v1 }
 0x924   : > { %2231 = vmatmul.mubr.msk.f32.vlgmr.msra.gmra.mrb[12].mxu0 %vm778_vm1, %v1692_v3 }
 0x9f7   : > { %v2232_v2 = vpop.f32.mrb[12].mxu0 }
 0x9f8   : > { %1777 = vst.msk [vmem:[%s615_s22 + $0x8] sm:$0xff] %vm1025_vm3, %v2232_v2  ;;  %v1767_v51 = vpop.f32.mrb[13].mxu0 }
 0x9f9   : > { %1776 = vst.msk [vmem:[%s615_s22] sm:$0xff] %vm1025_vm3, %v1767_v51 }
 0x9fa PF: > { %s30_s0 = sadd.s32 1, %s2411_s0  }
 0x9fb   : > { %p27_p4 = scmp.ge.s32.totalorder %s30_s0, 4  }
 0x9fd   :  { %29 = sbr.rel (!%p27_p4) target bundleno = 5 (0x5), region = 134 }

</bundles_post_ra>
